<compile_context>
chip_gen: v7x
topology: tpu7x:2x2x1
jax: 0.10.0
libtpu: 0.0.40
codegen_flags: <defaults>
</compile_context>

<pallas_src>
import functools

import jax
import jax.numpy as jnp
from jax.experimental import pallas as pl
from jax.experimental.pallas import tpu as pltpu

HIDDEN = 50        # logical hidden width of the PyTorch module
HIDDEN_PAD = 128   # lane-aligned hidden width used inside the kernel


def _round_up(x, m):
    return (x + m - 1) // m * m


def _vmem_budget_bytes():
    """~70% of this generation's physical VMEM (64 MiB v7x, 128 MiB v5e/v6e)."""
    cap = 64 * 1024 * 1024  # conservative default = smallest (v7x)
    try:
        info = pltpu.get_tpu_info()
        cap = int(getattr(info, "vmem_capacity_bytes", cap)) or cap
    except Exception:
        pass
    return int(cap * 0.70)


def _pick_tile(B, D, budget):
    """Batch-tile rows: ~2 MiB of x per tile, >=4 grid steps for big batches,
    clamped so live VMEM (x double-buffer + w1 + f32 hidden temps) fits."""
    tb = (2 * 1024 * 1024) // (D * 4)
    tb = max(256, (tb // 256) * 256)
    if B >= 1024:
        # keep >= 4 grid steps so both v7x TensorCores get >= 2 tiles each
        tb = min(tb, _round_up(pl.cdiv(B, 4), 256))
    tb = min(tb, _round_up(B, 8))

    def live(t):  # 2x buffered x + resident w1 + ~4 f32 (t,128) temps + out
        return 2 * t * D * 4 + D * HIDDEN_PAD * 4 + 4 * t * HIDDEN_PAD * 4 + 2 * t * 4

    while tb > 256 and live(tb) > budget:
        tb = max(256, (tb // 2 // 256) * 256)
    return tb


def _mlp_kernel(x_ref, w1_ref, b1_ref, w2_ref, b2_ref, o_ref, *, activation, mxu_bf16):
    x = x_ref[...]
    w1 = w1_ref[...]
    if mxu_bf16:
        # In-kernel cast (no extra HBM traffic); mainly a v5e MXU throughput win.
        x = x.astype(jnp.bfloat16)
        w1 = w1.astype(jnp.bfloat16)

    # fc1 on the MXU: [TB, D] @ [D, HPAD] + [1, HPAD], f32 accumulation.
    h = jnp.dot(x, w1, preferred_element_type=jnp.float32)
    h = h + b1_ref[...]

    # Activation chain mirrors the PyTorch if-chain (unknown string => identity).
    if activation == "relu":
        h = jnp.maximum(h, 0.0)
    elif activation == "tanh":
        h = jnp.tanh(h)
    elif activation == "sigmoid":
        h = jax.nn.sigmoid(h)

    # fc2 (output width 1): VPU multiply + cross-lane (XLU) sum; w2 is a
    # zero-padded [1, HPAD] row, b2 is an SMEM scalar.  Strictly per-row math,
    # so garbage OOB rows of a partial last block stay confined to OOB rows.
    y = jnp.sum(h * w2_ref[...], axis=-1, keepdims=True) + b2_ref[0, 0]
    o_ref[...] = jax.nn.sigmoid(y).astype(o_ref.dtype)


def mlp_forward(features, params, activation, *, block_b=None, mxu_bf16=False):
    """Forward pass of MultiLayerPerceptron as a single Pallas TPU kernel.

    features: [B, D] float
    params:   w1 [D, 50], b1 [1, 50], w2 [50, 1], b2 [1, 1]
    """
    B, D = features.shape
    H = params["w1"].shape[1]
    assert H <= HIDDEN_PAD

    # Lane-align the hidden dimension (zero padding keeps the math exact).
    w1 = jnp.zeros((D, HIDDEN_PAD), jnp.float32).at[:, :H].set(params["w1"])
    b1 = jnp.zeros((1, HIDDEN_PAD), jnp.float32).at[:, :H].set(params["b1"])
    w2_row = jnp.zeros((1, HIDDEN_PAD), jnp.float32).at[:, :H].set(params["w2"].T)
    b2 = params["b2"].reshape(1, 1).astype(jnp.float32)

    x = features if features.dtype == jnp.float32 else features.astype(jnp.float32)

    budget = _vmem_budget_bytes()
    if block_b is None:
        tb = _pick_tile(B, D, budget)
    else:
        tb = min(_round_up(block_b, 8), _round_up(B, 8))

    kernel = functools.partial(_mlp_kernel, activation=activation, mxu_bf16=mxu_bf16)

    out = pl.pallas_call(
        kernel,
        out_shape=jax.ShapeDtypeStruct((B, 1), jnp.float32),
        grid=(pl.cdiv(B, tb),),                                  # ragged: partial last block
        in_specs=[
            pl.BlockSpec((tb, D), lambda i: (i, 0)),             # x: streamed per tile
            pl.BlockSpec((D, HIDDEN_PAD), lambda i: (0, 0)),     # w1: resident
            pl.BlockSpec((1, HIDDEN_PAD), lambda i: (0, 0)),     # b1: resident
            pl.BlockSpec((1, HIDDEN_PAD), lambda i: (0, 0)),     # w2 row: resident
            pl.BlockSpec(memory_space=pltpu.MemorySpace.SMEM),   # b2 scalar
        ],
        out_specs=pl.BlockSpec((tb, 1), lambda i: (i, 0)),
        compiler_params=pltpu.CompilerParams(
            dimension_semantics=("parallel",),   # shard batch axis over TCs (v7x)
            vmem_limit_bytes=budget,             # generation-aware VMEM budget
        ),
    )(x, w1, b1, w2_row, b2)

    return out


def init_params(key, input_size, hidden=HIDDEN):
    """Deterministic init mirroring PyTorch nn.Linear default U(-1/sqrt(fan_in), +)."""
    k1, k2, k3, k4 = jax.random.split(key, 4)
    bound1 = 1.0 / jnp.sqrt(float(input_size))
    bound2 = 1.0 / jnp.sqrt(float(hidden))
    w1 = jax.random.uniform(k1, (input_size, hidden), jnp.float32, -bound1, bound1)
    b1 = jax.random.uniform(k2, (1, hidden), jnp.float32, -bound1, bound1)
    w2 = jax.random.uniform(k3, (hidden, 1), jnp.float32, -bound2, bound2)
    b2 = jax.random.uniform(k4, (1, 1), jnp.float32, -bound2, bound2)
    return {"w1": w1, "b1": b1, "w2": w2, "b2": b2}


def _reference(x, params, activation):
    h = x @ params["w1"] + params["b1"]
    if activation == "relu":
        h = jnp.maximum(h, 0.0)
    elif activation == "tanh":
        h = jnp.tanh(h)
    elif activation == "sigmoid":
        h = jax.nn.sigmoid(h)
    return jax.nn.sigmoid(h @ params["w2"] + params["b2"])


if __name__ == "__main__":
    key = jax.random.PRNGKey(0)
    k_params, k_x, k_x2, k_x3 = jax.random.split(key, 4)

    batch, input_size = 8, 32
    params = init_params(k_params, input_size)
    x = jax.random.normal(k_x, (batch, input_size), jnp.float32)

    # Check all activation variants against the plain-JAX reference.
    for act in ("relu", "tanh", "sigmoid"):
        out = mlp_forward(x, params, activation=act)
        jax.block_until_ready(out)
        ref = _reference(x, params, act)
        assert out.shape == (batch, 1)
        assert jnp.allclose(out, ref, atol=1e-5), f"mismatch vs reference ({act})"

    # Ragged batch, single tile (partial-block read/write path).
    x2 = jax.random.normal(k_x2, (13, input_size), jnp.float32)
    out2 = mlp_forward(x2, params, activation="relu")
    jax.block_until_ready(out2)
    ref2 = _reference(x2, params, "relu")
    assert out2.shape == (13, 1)
    assert jnp.allclose(out2, ref2, atol=1e-5), "mismatch vs reference (ragged batch)"

    # Ragged batch across multiple grid steps (forced small tile => partial last block).
    x3 = jax.random.normal(k_x3, (600, input_size), jnp.float32)
    out3 = mlp_forward(x3, params, activation="tanh", block_b=256)
    jax.block_until_ready(out3)
    ref3 = _reference(x3, params, "tanh")
    assert out3.shape == (600, 1)
    assert jnp.allclose(out3, ref3, atol=1e-5), "mismatch vs reference (multi-tile ragged)"

    print("KERNEL_OK")
</pallas_src>

<mosaic_0001>
module attributes {stable_mosaic.version = 11 : i64} {
  func.func @_mlp_kernel(%arg0: i32, %arg1: memref<8x32xf32, #tpu.memory_space<vmem>>, %arg2: memref<32x128xf32, #tpu.memory_space<vmem>>, %arg3: memref<1x128xf32, #tpu.memory_space<vmem>>, %arg4: memref<1x128xf32, #tpu.memory_space<vmem>>, %arg5: memref<1x1xf32, #tpu.memory_space<smem>>, %arg6: memref<8x1xf32, #tpu.memory_space<vmem>>) attributes {dimension_semantics = [#tpu.dimension_semantics<parallel>], iteration_bounds = array<i64: 1>, scalar_prefetch = 0 : i64, scratch_operands = 0 : i64, tpu.core_type = #tpu.core_type<tc>, window_params = [{transform_indices = @transform_0, window_bounds = array<i64: 8, 32>}, {pipeline_mode = #tpu.pipeline_mode<synchronous>, transform_indices = @transform_1, window_bounds = array<i64: 32, 128>}, {pipeline_mode = #tpu.pipeline_mode<synchronous>, transform_indices = @transform_2, window_bounds = array<i64: 1, 128>}, {pipeline_mode = #tpu.pipeline_mode<synchronous>, transform_indices = @transform_3, window_bounds = array<i64: 1, 128>}, {transform_indices = @transform_4, window_bounds = array<i64: 1, 1>}, {transform_indices = @transform_5, window_bounds = array<i64: 8, 1>}]} {
    %c0 = arith.constant 0 : index
    %c0_0 = arith.constant 0 : index
    %0 = vector.load %arg1[%c0, %c0_0] : memref<8x32xf32, #tpu.memory_space<vmem>>, vector<8x32xf32>
    %c0_1 = arith.constant 0 : index
    %c0_2 = arith.constant 0 : index
    %1 = vector.load %arg2[%c0_1, %c0_2] : memref<32x128xf32, #tpu.memory_space<vmem>>, vector<32x128xf32>
    %cst = arith.constant dense<0.000000e+00> : vector<8x128xf32>
    %2 = tpu.matmul %0, %1, %cst {dimension_numbers = #tpu.dot_dimension_numbers<[1], [0], [0], [1], [0, 0, 1, 1], [], []>} : vector<8x32xf32>, vector<32x128xf32>, vector<8x128xf32> -> vector<8x128xf32>
    %c0_3 = arith.constant 0 : index
    %c0_4 = arith.constant 0 : index
    %3 = vector.load %arg3[%c0_3, %c0_4] : memref<1x128xf32, #tpu.memory_space<vmem>>, vector<1x128xf32>
    %4 = vector.broadcast %3 : vector<1x128xf32> to vector<8x128xf32>
    %5 = arith.addf %2, %4 : vector<8x128xf32>
    %cst_5 = arith.constant 0.000000e+00 : f32
    %6 = vector.broadcast %cst_5 : f32 to vector<8x128xf32>
    %7 = arith.maximumf %5, %6 : vector<8x128xf32>
    %c0_6 = arith.constant 0 : index
    %c0_7 = arith.constant 0 : index
    %8 = vector.load %arg4[%c0_6, %c0_7] : memref<1x128xf32, #tpu.memory_space<vmem>>, vector<1x128xf32>
    %9 = vector.broadcast %8 : vector<1x128xf32> to vector<8x128xf32>
    %10 = arith.mulf %7, %9 : vector<8x128xf32>
    %cst_8 = arith.constant dense<0.000000e+00> : vector<8xf32>
    %11 = vector.multi_reduction <add>, %10, %cst_8 [1] : vector<8x128xf32> to vector<8xf32>
    %12 = vector.shape_cast %11 : vector<8xf32> to vector<8x1xf32>
    %c0_9 = arith.constant 0 : index
    %c0_10 = arith.constant 0 : index
    %13 = memref.load %arg5[%c0_9, %c0_10] : memref<1x1xf32, #tpu.memory_space<smem>>
    %14 = vector.broadcast %13 : f32 to vector<8x1xf32>
    %15 = arith.addf %12, %14 : vector<8x1xf32>
    %16 = arith.negf %15 : vector<8x1xf32>
    %17 = math.exp %16 : vector<8x1xf32>
    %cst_11 = arith.constant 1.000000e+00 : f32
    %18 = vector.broadcast %cst_11 : f32 to vector<8x1xf32>
    %19 = arith.addf %18, %17 : vector<8x1xf32>
    %20 = arith.divf %18, %19 : vector<8x1xf32>
    %c0_12 = arith.constant 0 : index
    %c0_13 = arith.constant 0 : index
    %21 = vector.load %arg6[%c0_12, %c0_13] : memref<8x1xf32, #tpu.memory_space<vmem>>, vector<8x1xf32>
    tpu.vector_store %arg6[%c0_12, %c0_13], %20 {strides = array<i32>} : memref<8x1xf32, #tpu.memory_space<vmem>>, vector<8x1xf32>,
    return
  }
  func.func @transform_0(%arg0: i32) -> (i32, i32) {
    %c0_i32 = arith.constant 0 : i32
    %c0_i32_0 = arith.constant 0 : i32
    return %arg0, %c0_i32 : i32, i32
  }
  func.func @transform_1(%arg0: i32) -> (i32, i32) {
    %c0_i32 = arith.constant 0 : i32
    %c0_i32_0 = arith.constant 0 : i32
    %c0_i32_1 = arith.constant 0 : i32
    return %c0_i32, %c0_i32_0 : i32, i32
  }
  func.func @transform_2(%arg0: i32) -> (i32, i32) {
    %c0_i32 = arith.constant 0 : i32
    %c0_i32_0 = arith.constant 0 : i32
    %c0_i32_1 = arith.constant 0 : i32
    return %c0_i32, %c0_i32_0 : i32, i32
  }
  func.func @transform_3(%arg0: i32) -> (i32, i32) {
    %c0_i32 = arith.constant 0 : i32
    %c0_i32_0 = arith.constant 0 : i32
    %c0_i32_1 = arith.constant 0 : i32
    return %c0_i32, %c0_i32_0 : i32, i32
  }
  func.func @transform_4(%arg0: i32) -> (i32, i32) {
    %c0_i32 = arith.constant 0 : i32
    %c0_i32_0 = arith.constant 0 : i32
    %c0_i32_1 = arith.constant 0 : i32
    return %c0_i32, %c0_i32_0 : i32, i32
  }
  func.func @transform_5(%arg0: i32) -> (i32, i32) {
    %c0_i32 = arith.constant 0 : i32
    %c0_i32_0 = arith.constant 0 : i32
    return %arg0, %c0_i32 : i32, i32
  }
}

</mosaic_0001>

<bundles_post_ra>
// kernel: tpu_custom_call.1
= control target key start
LH: loop header
LB: loop body
LE: loop exit
PB: predicated region body
PF: predicated region fallthrough
CT: control target
= control target key end

     0   :  { %11 = vsyncpa [#allocation4], 0  ;;  %s326_s0 = inlined_call_operand.hbm [shape: f32[8,32], index: 0, kind: input, shape index: {}]   ;;  %s327_s1 = inlined_call_operand.hbm [shape: f32[32,128], index: 1, kind: input, shape index: {}]   ;;  %s328_s2 = inlined_call_operand.vmem [shape: f32[1,128], index: 2, kind: input, shape index: {}]   ;;  %s329_s3 = inlined_call_operand.vmem [shape: f32[1,128], index: 3, kind: input, shape index: {}]   ;;  %s330_s4 = inlined_call_operand.<no memory space> [shape: f32[1,1], index: 4, kind: input, shape index: {}]   ;;  %s331_s5 = inlined_call_operand.vmem [shape: f32[8,1], index: 5, kind: output, shape index: {}]  }
   0x1   :  { %12 = vsyncpa [#allocation6], 0  ;;  %s246_s18 = smov [#allocation3]   ;;  %s247_s20 = smov [#allocation5]  }
   0x2   :  { %s19_s19 = sshll.u32 %s246_s18, 4  ;;  %s28_s21 = sshll.u32 %s247_s20, 4  ;;  %s20_s19 = int_to_ptr.vmem [resolvable:$true] %s19_s19  ;;  %s283_s21 = int_to_ptr.vmem [resolvable:$true] %s28_s21 }
   0x3   :  { %s198_s24 = scalar_lea.hbm %s326_s0, 128 }
   0x4   :  { %p199_p0 = scmp.ne.s32.totalorder %s326_s0, %s198_s24  ;;  %p202_p1 = scmp.lt.u32.totalorder %s198_s24, %s326_s0 }
   0x6   :  { %p204_p2 = pnand %p202_p1, %p199_p0 }
   0x8   :  { %207 = shalt.err (!%p204_p2)
}
   0x9   :  { %s208_s29 = scalar_lea.vmem %s20_s19, 128  ;;  %p213_p4 = scmp.lt.s32.totalorder %s20_s19, %s20_s19 }
   0xa   :  { %p209_p3 = scmp.ne.s32.totalorder %s20_s19, %s208_s29  ;;  %p214_p5 = scmp.lt.s32.totalorder %s208_s29, %s208_s29 }
   0xc   :  { %p215_p6 = por %p214_p5, %p213_p4 }
   0xe   :  { %p216_p7 = pnand %p215_p6, %p209_p3 }
  0x10   :  { %219 = shalt.err (!%p216_p7)
}
  0x11   :  { %22 = dma.hbm_to_vmem [thread:$0]  %s326_s0, 128, %s20_s19, [#allocation4]  }
  0x12   :  { %s220_s9 = scalar_lea.hbm %s327_s1, 512 }
  0x13   :  { %p221_p8 = scmp.ne.s32.totalorder %s327_s1, %s220_s9  ;;  %p224_p9 = scmp.lt.u32.totalorder %s220_s9, %s327_s1 }
  0x15   :  { %p226_p10 = pnand %p224_p9, %p221_p8 }
  0x17   :  { %229 = shalt.err (!%p226_p10)
}
  0x18   :  { %s230_s14 = scalar_lea.vmem %s283_s21, 512  ;;  %p235_p12 = scmp.lt.s32.totalorder %s283_s21, %s283_s21 }
  0x19   :  { %p231_p11 = scmp.ne.s32.totalorder %s283_s21, %s230_s14  ;;  %p236_p13 = scmp.lt.s32.totalorder %s230_s14, %s230_s14 }
  0x1b   :  { %p237_p0 = por %p236_p13, %p235_p12 }
  0x1d   :  { %p238_p1 = pnand %p237_p0, %p231_p11 }
  0x1f   :  { %241 = shalt.err (!%p238_p1)
}
  0x20   :  { %s248_s0 = smov 128   ;;  %s249_s15 = smov 8  }
  0x21   :  { %34 = dma.hbm_to_vmem [thread:$0]  %s327_s1, 512, %s283_s21, [#allocation6], %s248_s0, %s248_s0, %s249_s15  }
  0x22   :  { %242 = dma.done.wait [#allocation4], 128  }
  0x23   :  { %243 = vsyncadd [#allocation4], 4294967168 }
  0x24   :  { %244 = dma.done.wait [#allocation6], 512  }
  0x25   :  { %245 = vsyncadd [#allocation6], 4294966784  ;;  %v250_v0 = vmov 0.0|0.0   ;;  %vm251_vm0 = vmmov 0   ;;  %v252_v1 = vmov 0.0   ;;  %v48_v2 = vld [vmem:[#allocation5] sm:$0xff]  ;;  %v145_v16 = vstv %s330_s4 }
  0x26   :  { %181 = vmatprep.subr.bf16.mxu0 %v250_v0  ;;  %178 = vmatprep.mubr.msk.f32.mxu0 %vm251_vm0, %v252_v1  ;;  %v49_v3 = vld [vmem:[#allocation5 + $0x8] sm:$0xff]  ;;  %v50_v4 = vld [vmem:[#allocation5 + $0x10] sm:$0xff]  ;;  %v51_v6 = vld [vmem:[#allocation5 + $0x18] sm:$0xff]  ;;  %vm59_vm1 = vcmask 261120   ;;  %vm153_vm2 = vcmask 7168  }
  0x27   :  { %v182_v5 = vpack.c.bf16 %v49_v3, %v48_v2  ;;  %v185_v7 = vpack.c.bf16 %v51_v6, %v50_v4  ;;  %v47_v8 = vld [vmem:[#allocation3] sm:$0xff] }
  0x28   :  { %v161_v9 = vld [vmem:[%s328_s2] ss:$0 sm:$0xff] }
  0x29   :  { %183 = vmatpush3.bf16.msra.mxu0 %v182_v5  ;;  %v163_v13 = vld [vmem:[%s329_s3] ss:$0 sm:$0xff] }
  0x2a   :  { %184 = vmatprep.subr.bf16.mxu0 %v250_v0 }
  0x2d   :  { %186 = vmatpush3.bf16.msra.mxu0 %v185_v7 }
  0x30   :  { %179 = vmatmul.mubr.msk.f32.vlgmr.msra.gmra.mrb[0].mxu0 %vm59_vm1, %v47_v8 }
 0x103   :  { %v129_v10 = vpop.f32.mrb[0].mxu0 }
 0x104   :  { %v130_v11 = vadd.f32 %v161_v9, %v129_v10  ;;  %v180_v12 = vpop.f32.mrb[1].mxu0 }
 0x106   :  { %v133_v14 = vmax.f32 %v130_v11, 0.0 }
 0x108   :  { %v141_v15 = vmul.f32 %v163_v13, %v133_v14 }
 0x10a   :  { %142 = vadd.xlane.f32.xlu0 %v141_v15 }
 0x197   :  { %v143_v17 = vpop.xlane.xlu0 %142 }
 0x198   :  { %v146_v18 = vadd.f32 %v145_v16, %v143_v17 }
 0x19a   :  { %v164_v19 = vmul.f32 -1.442695, %v146_v18 }
 0x19c   :  { %194 = vpow2.f32 %v164_v19 }
 0x1a6   :  { %v195_v20 = vpop.eup %194 }
 0x1a7   :  { %v150_v21 = vadd.f32 1.0, %v195_v20 }
 0x1a9   :  { %196 = vrcp.f32 %v150_v21 }
 0x1b3   :  { %v197_v22 = vpop.eup %196 }
 0x1b4   :  { %154 = vst.msk [vmem:[%s331_s5] sm:$0xff] %vm153_vm2, %v197_v22 }
 0x1b5   :  { %159 = vsyncpa [#allocation4], 1 }
 0x1b6   :  { %160 = vsyncpa [#allocation6], 1 }

</bundles_post_ra>
